<compile_context>
chip_gen: v5e
topology: v5e:2x2
jax: 0.10.0
libtpu: 0.0.40
codegen_flags: <defaults>
</compile_context>

<pallas_src>
import math

import numpy as np
import jax
import jax.numpy as jnp
from jax.experimental import pallas as pl
from jax.experimental.pallas import tpu as pltpu

_LANE = 128                      # minimum lane width
_LANE_CANDIDATES = (4096, 2048, 1024, 512, 256, 128)
_TARGET_BLOCK_BYTES = 2 << 20    # ~2 MiB per block: safe for v5e/v6e/v7x scoped VMEM


def _qact_kernel(scale_ref, x_ref, o_ref):
    """scale_ref: SMEM f32[3] = [inv_alpha, n_lv, step]; x_ref/o_ref: VMEM blocks."""
    inv_alpha = scale_ref[0]
    n_lv = scale_ref[1]
    step = scale_ref[2]
    x = x_ref[...].astype(jnp.float32)
    # hardtanh(x / alpha, 0, 1) * n_lv ; STE terms cancel in the forward value.
    data_q = jnp.clip(x * inv_alpha, 0.0, 1.0) * n_lv
    o_ref[...] = (jnp.round(data_q) * step).astype(o_ref.dtype)


def _qact_scalars(bit_param, alpha_param):
    bit = jnp.round(2.0 + jax.nn.sigmoid(bit_param.astype(jnp.float32)) * 12.0)
    alpha = jax.nn.softplus(alpha_param.astype(jnp.float32))
    n_lv = 2.0 ** bit - 1.0
    inv_alpha = 1.0 / alpha
    step = alpha / n_lv
    return inv_alpha.reshape(-1), n_lv.reshape(-1), step.reshape(-1)


def q_act_forward(x, bit_param, alpha_param):
    """Q_Act.forward (eval / deterministic path) via a Pallas TPU kernel."""
    inv_alpha, n_lv, step = _qact_scalars(bit_param, alpha_param)
    scale = jnp.concatenate([inv_alpha, n_lv, step]).astype(jnp.float32)

    orig_shape = x.shape
    orig_dtype = x.dtype
    n = math.prod(orig_shape)
    flat = x.reshape(-1)

    # Widest lane dim (multiple of 128) that divides numel -> no pad, no output slice.
    lanew = next((c for c in _LANE_CANDIDATES if n % c == 0), None)
    if lanew is None:
        # Ragged numel: pad only up to the next multiple of 128 (rare fallback).
        lanew = _LANE
        pad = (-n) % _LANE
        flat = jnp.pad(flat, (0, pad))
    n_padded = flat.shape[0]
    rows = n_padded // lanew
    x2d = flat.reshape(rows, lanew)

    # Block rows: ~2 MiB per block, multiple of 8 (or the full row extent for small inputs).
    elem_bytes = jnp.dtype(orig_dtype).itemsize
    target_rows = max(8, (_TARGET_BLOCK_BYTES // (elem_bytes * lanew)) // 8 * 8)
    if target_rows >= rows:
        blk_rows = rows           # single block; block dim == full array dim is legal
        grid = (1,)
    else:
        blk_rows = target_rows
        grid = (pl.cdiv(rows, blk_rows),)   # last block may be partial (masked writeback)

    out2d = pl.pallas_call(
        _qact_kernel,
        out_shape=jax.ShapeDtypeStruct((rows, lanew), orig_dtype),
        grid=grid,
        in_specs=[
            pl.BlockSpec(memory_space=pltpu.MemorySpace.SMEM),       # [inv_alpha, n_lv, step]
            pl.BlockSpec((blk_rows, lanew), lambda i: (i, 0)),       # x block
        ],
        out_specs=pl.BlockSpec((blk_rows, lanew), lambda i: (i, 0)),
        compiler_params=pltpu.CompilerParams(dimension_semantics=("parallel",)),
    )(scale, x2d)

    out_flat = out2d.reshape(-1)
    if n_padded != n:
        out_flat = out_flat[:n]
    return out_flat.reshape(orig_shape)


def q_act_reference(x, bit_param, alpha_param):
    """Pure-JAX reference (same algebra as the kernel; equal to the torch eval path up to
    sub-ulp rounding from using x*(1/alpha) instead of x/alpha)."""
    inv_alpha, n_lv, step = _qact_scalars(bit_param, alpha_param)
    data_q = jnp.clip(x.astype(jnp.float32) * inv_alpha, 0.0, 1.0) * n_lv
    return (jnp.round(data_q) * step).astype(x.dtype)


if __name__ == "__main__":
    # Deterministic parameter init exactly as in Q_Act.__init__ (fixed_bit = 8).
    fixed_bit = 8
    b = (fixed_bit + 1e-05 - 2) / 12
    bit_param = jnp.array([np.log(b / (1 - b))], dtype=jnp.float32)   # self.bit
    alpha_param = jnp.array([6.0], dtype=jnp.float32)                 # self.alpha

    key = jax.random.PRNGKey(0)
    shapes = [
        (2, 4, 16, 16),    # primary NCHW test shape (numel % 128 == 0 fast path, grid=1)
        (4, 64, 56, 56),   # multi-block grid (blk_rows=128, grid=2) with partial last block
        (3, 5, 7, 11),     # ragged numel -> pad-to-128 fallback path
    ]
    for i, shape in enumerate(shapes):
        k = jax.random.fold_in(key, i)
        x = jax.random.normal(k, shape, dtype=jnp.float32) * 3.0
        out = jax.block_until_ready(q_act_forward(x, bit_param, alpha_param))
        ref = q_act_reference(x, bit_param, alpha_param)
        np.testing.assert_allclose(np.asarray(out), np.asarray(ref), rtol=1e-6, atol=1e-6)

    print("KERNEL_OK")
</pallas_src>

<mosaic_0001>
module attributes {stable_mosaic.version = 11 : i64} {
  func.func @_qact_kernel(%arg0: i32, %arg1: memref<3xf32, #tpu.memory_space<smem>>, %arg2: memref<1x2048xf32, #tpu.memory_space<vmem>>, %arg3: memref<1x2048xf32, #tpu.memory_space<vmem>>) attributes {dimension_semantics = [#tpu.dimension_semantics<parallel>], iteration_bounds = array<i64: 1>, scalar_prefetch = 0 : i64, scratch_operands = 0 : i64, tpu.core_type = #tpu.core_type<tc>, window_params = [{transform_indices = @transform_0, window_bounds = array<i64: 3>}, {transform_indices = @transform_1, window_bounds = array<i64: 1, 2048>}, {transform_indices = @transform_2, window_bounds = array<i64: 1, 2048>}]} {
    %c0 = arith.constant 0 : index
    %0 = memref.load %arg1[%c0] : memref<3xf32, #tpu.memory_space<smem>>
    %c1 = arith.constant 1 : index
    %1 = memref.load %arg1[%c1] : memref<3xf32, #tpu.memory_space<smem>>
    %c2 = arith.constant 2 : index
    %2 = memref.load %arg1[%c2] : memref<3xf32, #tpu.memory_space<smem>>
    %c0_0 = arith.constant 0 : index
    %c0_1 = arith.constant 0 : index
    %3 = vector.load %arg2[%c0_0, %c0_1] : memref<1x2048xf32, #tpu.memory_space<vmem>>, vector<1x2048xf32>
    %4 = vector.broadcast %0 : f32 to vector<1x2048xf32>
    %5 = arith.mulf %3, %4 : vector<1x2048xf32>
    %cst = arith.constant 0.000000e+00 : f32
    %cst_2 = arith.constant 1.000000e+00 : f32
    %6 = vector.broadcast %cst : f32 to vector<1x2048xf32>
    %7 = arith.maximumf %6, %5 : vector<1x2048xf32>
    %8 = vector.broadcast %cst_2 : f32 to vector<1x2048xf32>
    %9 = arith.minimumf %8, %7 : vector<1x2048xf32>
    %10 = vector.broadcast %1 : f32 to vector<1x2048xf32>
    %11 = arith.mulf %9, %10 : vector<1x2048xf32>
    %12 = math.roundeven %11 : vector<1x2048xf32>
    %13 = vector.broadcast %2 : f32 to vector<1x2048xf32>
    %14 = arith.mulf %12, %13 : vector<1x2048xf32>
    %c0_3 = arith.constant 0 : index
    %c0_4 = arith.constant 0 : index
    %15 = vector.load %arg3[%c0_3, %c0_4] : memref<1x2048xf32, #tpu.memory_space<vmem>>, vector<1x2048xf32>
    tpu.vector_store %arg3[%c0_3, %c0_4], %14 {strides = array<i32>} : memref<1x2048xf32, #tpu.memory_space<vmem>>, vector<1x2048xf32>,
    return
  }
  func.func @transform_0(%arg0: i32) -> i32 {
    %c0_i32 = arith.constant 0 : i32
    %c0_i32_0 = arith.constant 0 : i32
    return %c0_i32 : i32
  }
  func.func @transform_1(%arg0: i32) -> (i32, i32) {
    %c0_i32 = arith.constant 0 : i32
    %c0_i32_0 = arith.constant 0 : i32
    return %arg0, %c0_i32 : i32, i32
  }
  func.func @transform_2(%arg0: i32) -> (i32, i32) {
    %c0_i32 = arith.constant 0 : i32
    %c0_i32_0 = arith.constant 0 : i32
    return %arg0, %c0_i32 : i32, i32
  }
}

</mosaic_0001>

<bundles_post_ra>
// kernel: tpu_custom_call.1
= control target key start
LH: loop header
LB: loop body
LE: loop exit
PB: predicated region body
PF: predicated region fallthrough
CT: control target
= control target key end

     0   :  { %7 = vsyncpa [#allocation5], 0  ;;  %s193_s0 = inlined_call_operand.hbm [shape: f32[3], index: 0, kind: input, shape index: {}]   ;;  %s194_s1 = inlined_call_operand.hbm [shape: f32[1,2048], index: 1, kind: input, shape index: {}]   ;;  %s195_s2 = inlined_call_operand.hbm [shape: f32[1,2048], index: 2, kind: output, shape index: {}]  }
   0x1   :  { %8 = vsyncpa [#allocation3], 0 }
   0x2   :  { %9 = vsyncpa [#allocation4], 0  ;;  %s15_s11 = sshll.u32 %s193_s0, 4  ;;  %s24_s14 = sshll.u32 %s194_s1, 4  ;;  %s16_s11 = int_to_ptr.hbm [resolvable:$true] %s15_s11  ;;  %s25_s14 = int_to_ptr.hbm [resolvable:$true] %s24_s14 }
   0x3   :  { %s166_s15 = smov [#allocation2]   ;;  %s167_s16 = smov [#allocation6]  }
   0x4   :  { %18 = dma.hbm_to_smem %s16_s11, 16, %s166_s15, [#allocation5]  }
   0x5   :  { %s26_s17 = sshll.u32 %s167_s16, 4  ;;  %s27_s17 = int_to_ptr.vmem [resolvable:$true] %s26_s17 }
   0x6   :  { %29 = dma.hbm_to_vmem [thread:$0]  %s25_s14, 256, %s27_s17, [#allocation3]  }
   0x7   :  { %160 = dma.done.wait [#allocation5], 16  }
   0x8   :  { %161 = vsyncadd [#allocation5], 4294967280 }
   0x9   :  { %162 = dma.done.wait [#allocation3], 256  }
   0xa   :  { %163 = vsyncadd [#allocation3], 4294967040 }
   0xb   :  { %38 = sfence }
   0xc   :  { %s39_s18 = sld [smem:[#allocation2]]  ;;  %v42_v0 = vld [vmem:[#allocation6] sm:$0xff]  ;;  %v43_v1 = vld [vmem:[#allocation6 + $0x8] sm:$0xff]  ;;  %s168_s1 = smov [#allocation7]  }
   0xd   :  { %s79_s19 = sld [smem:[#allocation2 + $0x1]]  ;;  %s66_s20 = sshll.u32 %s168_s1, 4  ;;  %s67_s20 = int_to_ptr.vmem [resolvable:$true] %s66_s20 }
   0xe   :  { %s80_s0 = sld [smem:[#allocation2 + $0x2]]  ;;  %s68_s23 = sshll.u32 %s195_s2, 4  ;;  %s69_s23 = int_to_ptr.hbm [resolvable:$true] %s68_s23 }
  0x12   :  { %v44_v2 = vstv %s39_s18 }
  0x13   :  { %v45_v3 = vmul.f32 %v44_v2, %v42_v0  ;;  %v46_v4 = vmul.f32 %v44_v2, %v43_v1  ;;  %v51_v7 = vstv %s79_s19 }
  0x14   :  { %v56_v23 = vstv %s80_s0 }
  0x15   :  { %v47_v5 = vmax.f32 %v45_v3, 0.0  ;;  %v48_v6 = vmax.f32 %v46_v4, 0.0 }
  0x17   :  { %v49_v8 = vmin.f32 %v47_v5, 1.0  ;;  %v50_v9 = vmin.f32 %v48_v6, 1.0 }
  0x19   :  { %v52_v10 = vmul.f32 %v51_v7, %v49_v8  ;;  %v53_v11 = vmul.f32 %v51_v7, %v50_v9 }
  0x1b   :  { %v83_v12 = vcvt.f32.s32 %v52_v10  ;;  %v81_v13 = vand.u32 2147483647, %v52_v10  ;;  %v91_v14 = vcvt.f32.s32 %v53_v11  ;;  %v86_v16 = vand.u32 2147483648, %v52_v10 }
  0x1c   :  { %v89_v17 = vand.u32 2147483647, %v53_v11  ;;  %v94_v19 = vand.u32 2147483648, %v53_v11 }
  0x1d   :  { %v84_v15 = vcvt.s32.f32 %v83_v12  ;;  %v92_v18 = vcvt.s32.f32 %v91_v14  ;;  %vm82_vm0 = vcmp.lt.f32.partialorder %v81_v13, 8388608.0 }
  0x1e   :  { %vm90_vm1 = vcmp.lt.f32.partialorder %v89_v17, 8388608.0 }
  0x1f   :  { %v85_v20 = vand.u32 2147483647, %v84_v15  ;;  %v93_v21 = vand.u32 2147483647, %v92_v18 }
  0x21   :  { %v87_v22 = vor.u32 %v86_v16, %v85_v20  ;;  %v95_v24 = vor.u32 %v94_v19, %v93_v21 }
  0x23   :  { %v88_v25 = vsel %vm82_vm0, %v87_v22, %v52_v10  ;;  %v96_v27 = vsel %vm90_vm1, %v95_v24, %v53_v11 }
  0x24   :  { %v57_v26 = vmul.f32 %v88_v25, %v56_v23  ;;  %v58_v28 = vmul.f32 %v96_v27, %v56_v23 }
  0x26   :  { %59 = vst [vmem:[#allocation7] sm:$0xff] %v57_v26 }
  0x27   :  { %60 = vst [vmem:[#allocation7 + $0x8] sm:$0xff] %v58_v28 }
  0x28   :  { %71 = dma.vmem_to_hbm [thread:$0]  %s67_s20, 256, %s69_s23, [#allocation4]  }
  0x29   :  { %164 = dma.done.wait [#allocation4], 256  }
  0x2a   :  { %165 = vsyncadd [#allocation4], 4294967040 }
  0x2b   :  { %76 = vsyncpa [#allocation3], 1 }
  0x2c   :  { %77 = vsyncpa [#allocation4], 1 }
  0x2d   :  { %78 = vsyncpa [#allocation5], 1 }

</bundles_post_ra>
